<compile_context>
chip_gen: v7x
topology: tpu7x:2x2x1
jax: 0.10.0
libtpu: 0.0.40
codegen_flags: <defaults>
</compile_context>

<pallas_src>
import functools

import jax
import jax.numpy as jnp
from jax import lax
from jax.experimental import pallas as pl
from jax.experimental.pallas import tpu as pltpu

# ---- small, module-consistent hyperparameters (module: n_embd=384, n_heads=6) ----
N_EMBD = 128           # C  (kept a multiple of 128 so lanes are dense, like 384)
N_HEADS = 4
HEAD_SIZE = N_EMBD     # forward() feeds `out` (B,T,head_size) into Linear(n_embd, n_embd)
HEAD_DIM = HEAD_SIZE // N_HEADS
BATCH = 2
SEQ = 16               # T <= block_size (causal mask built in-kernel from iota)
B_TILE = 1             # batch elements per grid step (1 keeps 2 parallel steps for v7x)


def mha_kernel(x_ref, wqkv_ref, wproj_ref, bproj_ref, o_ref, *,
               n_heads, head_size, seq_len, b_tile):
    # x_ref:     (b_tile*T, C)   compute dtype (bf16 or f32), lane-dense (C = 128)
    # wqkv_ref:  (C, 3*HS)       compute dtype
    # wproj_ref: (HS, C)         compute dtype
    # bproj_ref: (1, C)          f32
    # o_ref:     (b_tile*T, C)   f32 output block (lane-dense, unmasked stores)
    T = seq_len
    hd = head_size // n_heads
    C = o_ref.shape[-1]
    cd = x_ref.dtype                           # MXU operand dtype

    x = x_ref[...]
    wqkv = wqkv_ref[...]

    # ---- fused QKV projection: one (b_tile*T, C) x (C, 3*HS) MXU op, f32 accum ----
    qkv = jnp.dot(x, wqkv, preferred_element_type=jnp.float32)

    # causal mask (== tril[:T,:T] == 0 -> masked). Large finite negative instead of
    # -inf so a fully-masked row (padded/variable-length extension) cannot NaN.
    row = lax.broadcasted_iota(jnp.int32, (T, T), 0)
    col = lax.broadcasted_iota(jnp.int32, (T, T), 1)
    causal = col <= row
    neg = jnp.float32(-1e30)

    for b in range(b_tile):                    # static; b_tile*T rows per block
        r0 = b * T
        # 128-lane-aligned slices of the fused projection result (free at these offsets).
        q = qkv[r0:r0 + T, 0:head_size]
        k = qkv[r0:r0 + T, head_size:2 * head_size]
        v = qkv[r0:r0 + T, 2 * head_size:3 * head_size]

        acc = jnp.zeros((T, C), jnp.float32)   # output-projection accumulator (f32)
        for h in range(n_heads):               # static unroll; no list/concat kept live
            qh = q[:, h * hd:(h + 1) * hd].astype(cd)
            kh = k[:, h * hd:(h + 1) * hd].astype(cd)
            vh = v[:, h * hd:(h + 1) * hd].astype(cd)

            # NOTE: the PyTorch module does NOT scale by 1/sqrt(hd); reproduce exactly.
            s = lax.dot_general(qh, kh, (((1,), (1,)), ((), ())),
                                preferred_element_type=jnp.float32)      # (T, T)
            s = jnp.where(causal, s, neg)

            # softmax in f32; divide -> EUP approx reciprocal + 1 Newton step (f32-exact)
            s = s - jnp.max(s, axis=-1, keepdims=True)
            p = jnp.exp(s)
            denom = jnp.sum(p, axis=-1, keepdims=True)
            inv = pl.reciprocal(denom, approx=True)
            inv = inv * (2.0 - denom * inv)
            p = p * inv
            # TODO(synk): attn_dropout would apply to p here in training mode.

            pv = jnp.dot(p.astype(cd), vh, preferred_element_type=jnp.float32)  # (T, hd)

            # Fold "concat heads -> project" into per-head partial projections:
            #   out @ Wp == sum_h out_h @ Wp[h*hd:(h+1)*hd, :]
            acc = acc + jnp.dot(pv.astype(cd),
                                wproj_ref[h * hd:(h + 1) * hd, :],
                                preferred_element_type=jnp.float32)

        y = acc + bproj_ref[...]               # (T, C) + (1, C) broadcast, f32
        o_ref[r0:r0 + T, :] = y.astype(o_ref.dtype)
        # TODO(synk): proj_dropout would apply here in training mode.


def mha_forward(x, wqkv, wproj, bproj, *, n_heads, use_bf16_matmul=True, b_tile=B_TILE):
    """x: (B, T, C); wqkv: (C, 3*HS); wproj: (HS, C); bproj: (1, C). Returns (B, T, C)."""
    B, T, C = x.shape
    HS = wqkv.shape[1] // 3
    assert HS % n_heads == 0 and B % b_tile == 0
    out_dtype = x.dtype
    cd = jnp.bfloat16 if use_bf16_matmul else x.dtype

    # Fold batch into the matmul M dimension; lane-dense (C = 128-multiple) 2-D blocks.
    x2 = x.reshape(B * T, C).astype(cd)
    wqkv_c = wqkv.astype(cd)
    wproj_c = wproj.astype(cd)
    bproj_f32 = bproj.astype(jnp.float32)

    M = b_tile * T
    kernel = functools.partial(mha_kernel, n_heads=n_heads, head_size=HS,
                               seq_len=T, b_tile=b_tile)
    out2 = pl.pallas_call(
        kernel,
        out_shape=jax.ShapeDtypeStruct((B * T, C), out_dtype),
        grid_spec=pl.GridSpec(
            grid=(B // b_tile,),
            in_specs=[
                pl.BlockSpec((M, C), lambda i: (i, 0)),          # x rows for this tile
                pl.BlockSpec((C, 3 * HS), lambda i: (0, 0)),     # fused QKV weight
                pl.BlockSpec((HS, C), lambda i: (0, 0)),         # output projection
                pl.BlockSpec((1, C), lambda i: (0, 0)),          # projection bias
            ],
            out_specs=pl.BlockSpec((M, C), lambda i: (i, 0)),
        ),
        # Batch-tile axis is independent -> "parallel" (shards across v7x's 2 TCs).
        compiler_params=pltpu.CompilerParams(dimension_semantics=("parallel",)),
    )(x2, wqkv_c, wproj_c, bproj_f32)
    return out2.reshape(B, T, C)


def mha_reference(x, wqkv, wproj, bproj, n_heads, matmul_dtype=jnp.float32):
    """Plain-JAX reference mirroring the PyTorch forward (eval mode).

    matmul_dtype=float32  -> exact f32 module semantics (precision=HIGHEST).
    matmul_dtype=bfloat16 -> casts matmul operands at the same points as the kernel's
                             bf16 fast path (f32 accumulation / f32 softmax), so the
                             kernel can be checked against it with a tight tolerance.
    """
    B, T, C = x.shape
    HS = wqkv.shape[1] // 3
    hd = HS // n_heads
    hp = lax.Precision.HIGHEST
    md = matmul_dtype

    qkv = jnp.dot(x.astype(md), wqkv.astype(md),
                  precision=hp, preferred_element_type=jnp.float32)     # (B, T, 3*HS) f32
    q, k, v = jnp.split(qkv, 3, axis=-1)

    def heads(t):  # (B, T, HS) -> (B, nh, T, hd)
        return t.reshape(B, T, n_heads, hd).transpose(0, 2, 1, 3)

    q, k, v = heads(q), heads(k), heads(v)
    w = jnp.einsum("bhqd,bhkd->bhqk", q.astype(md), k.astype(md),
                   precision=hp, preferred_element_type=jnp.float32)    # no 1/sqrt(hd)
    mask = jnp.tril(jnp.ones((T, T), dtype=bool))
    w = jnp.where(mask, w, -jnp.inf)
    w = jax.nn.softmax(w, axis=-1)
    out = jnp.einsum("bhqk,bhkd->bhqd", w.astype(md), v.astype(md),
                     precision=hp, preferred_element_type=jnp.float32)
    out = out.transpose(0, 2, 1, 3).reshape(B, T, HS)
    return jnp.dot(out.astype(md), wproj.astype(md),
                   precision=hp, preferred_element_type=jnp.float32) + bproj[0]


if __name__ == "__main__":
    key = jax.random.PRNGKey(0)
    kx, k1, k2, k3 = jax.random.split(key, 4)

    x = jax.random.normal(kx, (BATCH, SEQ, N_EMBD), dtype=jnp.float32)

    # Deterministic parameter init (PyTorch-Linear-style uniform bounds),
    # stored pre-transposed as (in_features, out_features).
    bound = 1.0 / jnp.sqrt(jnp.float32(N_EMBD))
    wqkv = jax.random.uniform(k1, (N_EMBD, 3 * HEAD_SIZE), jnp.float32, -bound, bound)
    wproj = jax.random.uniform(k2, (HEAD_SIZE, N_EMBD), jnp.float32, -bound, bound)
    bproj = jax.random.uniform(k3, (1, N_EMBD), jnp.float32, -bound, bound)

    out = mha_forward(x, wqkv, wproj, bproj, n_heads=N_HEADS, use_bf16_matmul=True)
    out = jax.block_until_ready(out)
    assert out.shape == (BATCH, SEQ, N_EMBD)

    # 1) Structural correctness: compare against a reference that casts matmul
    #    operands at the same points as the kernel (tight tolerance).
    ref_matched = mha_reference(x, wqkv, wproj, bproj, N_HEADS, matmul_dtype=jnp.bfloat16)
    assert jnp.allclose(out, ref_matched, atol=2e-3, rtol=2e-3), \
        "mismatch vs matched-precision reference"

    # 2) Numerical envelope vs. the exact f32 module semantics (bf16 operand rounding
    #    dominates the error, hence the looser tolerance).
    ref_exact = mha_reference(x, wqkv, wproj, bproj, N_HEADS, matmul_dtype=jnp.float32)
    assert jnp.allclose(out, ref_exact, atol=5e-2, rtol=5e-2), \
        "mismatch vs exact f32 reference"

    print("KERNEL_OK")
</pallas_src>

<mosaic_0001>
module attributes {stable_mosaic.version = 11 : i64} {
  func.func @mha_kernel(%arg0: i32, %arg1: memref<16x128xbf16, #tpu.memory_space<vmem>>, %arg2: memref<128x384xbf16, #tpu.memory_space<vmem>>, %arg3: memref<128x128xbf16, #tpu.memory_space<vmem>>, %arg4: memref<1x128xf32, #tpu.memory_space<vmem>>, %arg5: memref<16x128xf32, #tpu.memory_space<vmem>>) attributes {dimension_semantics = [#tpu.dimension_semantics<parallel>], iteration_bounds = array<i64: 2>, scalar_prefetch = 0 : i64, scratch_operands = 0 : i64, tpu.core_type = #tpu.core_type<tc>, window_params = [{transform_indices = @transform_0, window_bounds = array<i64: 16, 128>}, {pipeline_mode = #tpu.pipeline_mode<synchronous>, transform_indices = @transform_1, window_bounds = array<i64: 128, 384>}, {pipeline_mode = #tpu.pipeline_mode<synchronous>, transform_indices = @transform_2, window_bounds = array<i64: 128, 128>}, {pipeline_mode = #tpu.pipeline_mode<synchronous>, transform_indices = @transform_3, window_bounds = array<i64: 1, 128>}, {transform_indices = @transform_4, window_bounds = array<i64: 16, 128>}]} {
    %c0 = arith.constant 0 : index
    %c0_0 = arith.constant 0 : index
    %0 = vector.load %arg1[%c0, %c0_0] : memref<16x128xbf16, #tpu.memory_space<vmem>>, vector<16x128xbf16>
    %c0_1 = arith.constant 0 : index
    %c0_2 = arith.constant 0 : index
    %1 = vector.load %arg2[%c0_1, %c0_2] : memref<128x384xbf16, #tpu.memory_space<vmem>>, vector<128x384xbf16>
    %cst = arith.constant dense<0.000000e+00> : vector<16x384xf32>
    %2 = tpu.matmul %0, %1, %cst {dimension_numbers = #tpu.dot_dimension_numbers<[1], [0], [0], [1], [0, 0, 1, 1], [], []>} : vector<16x128xbf16>, vector<128x384xbf16>, vector<16x384xf32> -> vector<16x384xf32>
    %3 = tpu.iota {dimensions = array<i32: 0>} : vector<16x16xi32>
    %4 = tpu.iota {dimensions = array<i32: 1>} : vector<16x16xi32>
    %5 = arith.cmpi sle, %4, %3 : vector<16x16xi32>
    %6 = vector.extract_strided_slice %2 {offsets = [0, 0], sizes = [16, 128], strides = [1, 1]} : vector<16x384xf32> to vector<16x128xf32>
    %7 = vector.extract_strided_slice %2 {offsets = [0, 128], sizes = [16, 128], strides = [1, 1]} : vector<16x384xf32> to vector<16x128xf32>
    %8 = vector.extract_strided_slice %2 {offsets = [0, 256], sizes = [16, 128], strides = [1, 1]} : vector<16x384xf32> to vector<16x128xf32>
    %cst_3 = arith.constant 0.000000e+00 : f32
    %9 = vector.broadcast %cst_3 : f32 to vector<16x128xf32>
    %10 = vector.extract_strided_slice %6 {offsets = [0, 0], sizes = [16, 32], strides = [1, 1]} : vector<16x128xf32> to vector<16x32xf32>
    %11 = arith.truncf %10 : vector<16x32xf32> to vector<16x32xbf16>
    %12 = vector.extract_strided_slice %7 {offsets = [0, 0], sizes = [16, 32], strides = [1, 1]} : vector<16x128xf32> to vector<16x32xf32>
    %13 = arith.truncf %12 : vector<16x32xf32> to vector<16x32xbf16>
    %14 = vector.extract_strided_slice %8 {offsets = [0, 0], sizes = [16, 32], strides = [1, 1]} : vector<16x128xf32> to vector<16x32xf32>
    %15 = arith.truncf %14 : vector<16x32xf32> to vector<16x32xbf16>
    %cst_4 = arith.constant dense<0.000000e+00> : vector<16x16xf32>
    %16 = tpu.matmul %11, %13, %cst_4 {dimension_numbers = #tpu.dot_dimension_numbers<[1], [1], [0], [0], [0, 0, 1, 0], [], []>} : vector<16x32xbf16>, vector<16x32xbf16>, vector<16x16xf32> -> vector<16x16xf32>
    %cst_5 = arith.constant -1.000000e+30 : f32
    %17 = vector.broadcast %cst_5 : f32 to vector<16x16xf32>
    %18 = arith.select %5, %16, %17 : vector<16x16xi1>, vector<16x16xf32>
    %cst_6 = arith.constant dense<0xFF800000> : vector<16xf32>
    %19 = vector.multi_reduction <maximumf>, %18, %cst_6 [1] : vector<16x16xf32> to vector<16xf32>
    %20 = vector.shape_cast %19 : vector<16xf32> to vector<16x1xf32>
    %21 = vector.broadcast %20 : vector<16x1xf32> to vector<16x16xf32>
    %22 = arith.subf %18, %21 : vector<16x16xf32>
    %23 = math.exp %22 : vector<16x16xf32>
    %cst_7 = arith.constant dense<0.000000e+00> : vector<16xf32>
    %24 = vector.multi_reduction <add>, %23, %cst_7 [1] : vector<16x16xf32> to vector<16xf32>
    %25 = vector.shape_cast %24 : vector<16xf32> to vector<16x1xf32>
    %26 = tpu.reciprocal %25 {approx = true} : vector<16x1xf32> -> vector<16x1xf32>
    %27 = arith.mulf %25, %26 : vector<16x1xf32>
    %cst_8 = arith.constant 2.000000e+00 : f32
    %28 = vector.broadcast %cst_8 : f32 to vector<16x1xf32>
    %29 = arith.subf %28, %27 : vector<16x1xf32>
    %30 = arith.mulf %26, %29 : vector<16x1xf32>
    %31 = vector.broadcast %30 : vector<16x1xf32> to vector<16x16xf32>
    %32 = arith.mulf %23, %31 : vector<16x16xf32>
    %33 = arith.truncf %32 : vector<16x16xf32> to vector<16x16xbf16>
    %cst_9 = arith.constant dense<0.000000e+00> : vector<16x32xf32>
    %34 = tpu.matmul %33, %15, %cst_9 {dimension_numbers = #tpu.dot_dimension_numbers<[1], [0], [0], [1], [0, 0, 1, 1], [], []>} : vector<16x16xbf16>, vector<16x32xbf16>, vector<16x32xf32> -> vector<16x32xf32>
    %35 = arith.truncf %34 : vector<16x32xf32> to vector<16x32xbf16>
    %c0_10 = arith.constant 0 : index
    %c0_11 = arith.constant 0 : index
    %36 = vector.load %arg3[%c0_10, %c0_11] : memref<128x128xbf16, #tpu.memory_space<vmem>>, vector<32x128xbf16>
    %cst_12 = arith.constant dense<0.000000e+00> : vector<16x128xf32>
    %37 = tpu.matmul %35, %36, %cst_12 {dimension_numbers = #tpu.dot_dimension_numbers<[1], [0], [0], [1], [0, 0, 1, 1], [], []>} : vector<16x32xbf16>, vector<32x128xbf16>, vector<16x128xf32> -> vector<16x128xf32>
    %38 = arith.addf %9, %37 : vector<16x128xf32>
    %39 = vector.extract_strided_slice %6 {offsets = [0, 32], sizes = [16, 32], strides = [1, 1]} : vector<16x128xf32> to vector<16x32xf32>
    %40 = arith.truncf %39 : vector<16x32xf32> to vector<16x32xbf16>
    %41 = vector.extract_strided_slice %7 {offsets = [0, 32], sizes = [16, 32], strides = [1, 1]} : vector<16x128xf32> to vector<16x32xf32>
    %42 = arith.truncf %41 : vector<16x32xf32> to vector<16x32xbf16>
    %43 = vector.extract_strided_slice %8 {offsets = [0, 32], sizes = [16, 32], strides = [1, 1]} : vector<16x128xf32> to vector<16x32xf32>
    %44 = arith.truncf %43 : vector<16x32xf32> to vector<16x32xbf16>
    %cst_13 = arith.constant dense<0.000000e+00> : vector<16x16xf32>
    %45 = tpu.matmul %40, %42, %cst_13 {dimension_numbers = #tpu.dot_dimension_numbers<[1], [1], [0], [0], [0, 0, 1, 0], [], []>} : vector<16x32xbf16>, vector<16x32xbf16>, vector<16x16xf32> -> vector<16x16xf32>
    %cst_14 = arith.constant -1.000000e+30 : f32
    %46 = vector.broadcast %cst_14 : f32 to vector<16x16xf32>
    %47 = arith.select %5, %45, %46 : vector<16x16xi1>, vector<16x16xf32>
    %cst_15 = arith.constant dense<0xFF800000> : vector<16xf32>
    %48 = vector.multi_reduction <maximumf>, %47, %cst_15 [1] : vector<16x16xf32> to vector<16xf32>
    %49 = vector.shape_cast %48 : vector<16xf32> to vector<16x1xf32>
    %50 = vector.broadcast %49 : vector<16x1xf32> to vector<16x16xf32>
    %51 = arith.subf %47, %50 : vector<16x16xf32>
    %52 = math.exp %51 : vector<16x16xf32>
    %cst_16 = arith.constant dense<0.000000e+00> : vector<16xf32>
    %53 = vector.multi_reduction <add>, %52, %cst_16 [1] : vector<16x16xf32> to vector<16xf32>
    %54 = vector.shape_cast %53 : vector<16xf32> to vector<16x1xf32>
    %55 = tpu.reciprocal %54 {approx = true} : vector<16x1xf32> -> vector<16x1xf32>
    %56 = arith.mulf %54, %55 : vector<16x1xf32>
    %cst_17 = arith.constant 2.000000e+00 : f32
    %57 = vector.broadcast %cst_17 : f32 to vector<16x1xf32>
    %58 = arith.subf %57, %56 : vector<16x1xf32>
    %59 = arith.mulf %55, %58 : vector<16x1xf32>
    %60 = vector.broadcast %59 : vector<16x1xf32> to vector<16x16xf32>
    %61 = arith.mulf %52, %60 : vector<16x16xf32>
    %62 = arith.truncf %61 : vector<16x16xf32> to vector<16x16xbf16>
    %cst_18 = arith.constant dense<0.000000e+00> : vector<16x32xf32>
    %63 = tpu.matmul %62, %44, %cst_18 {dimension_numbers = #tpu.dot_dimension_numbers<[1], [0], [0], [1], [0, 0, 1, 1], [], []>} : vector<16x16xbf16>, vector<16x32xbf16>, vector<16x32xf32> -> vector<16x32xf32>
    %64 = arith.truncf %63 : vector<16x32xf32> to vector<16x32xbf16>
    %c32 = arith.constant 32 : index
    %c0_19 = arith.constant 0 : index
    %65 = vector.load %arg3[%c32, %c0_19] : memref<128x128xbf16, #tpu.memory_space<vmem>>, vector<32x128xbf16>
    %cst_20 = arith.constant dense<0.000000e+00> : vector<16x128xf32>
    %66 = tpu.matmul %64, %65, %cst_20 {dimension_numbers = #tpu.dot_dimension_numbers<[1], [0], [0], [1], [0, 0, 1, 1], [], []>} : vector<16x32xbf16>, vector<32x128xbf16>, vector<16x128xf32> -> vector<16x128xf32>
    %67 = arith.addf %38, %66 : vector<16x128xf32>
    %68 = vector.extract_strided_slice %6 {offsets = [0, 64], sizes = [16, 32], strides = [1, 1]} : vector<16x128xf32> to vector<16x32xf32>
    %69 = arith.truncf %68 : vector<16x32xf32> to vector<16x32xbf16>
    %70 = vector.extract_strided_slice %7 {offsets = [0, 64], sizes = [16, 32], strides = [1, 1]} : vector<16x128xf32> to vector<16x32xf32>
    %71 = arith.truncf %70 : vector<16x32xf32> to vector<16x32xbf16>
    %72 = vector.extract_strided_slice %8 {offsets = [0, 64], sizes = [16, 32], strides = [1, 1]} : vector<16x128xf32> to vector<16x32xf32>
    %73 = arith.truncf %72 : vector<16x32xf32> to vector<16x32xbf16>
    %cst_21 = arith.constant dense<0.000000e+00> : vector<16x16xf32>
    %74 = tpu.matmul %69, %71, %cst_21 {dimension_numbers = #tpu.dot_dimension_numbers<[1], [1], [0], [0], [0, 0, 1, 0], [], []>} : vector<16x32xbf16>, vector<16x32xbf16>, vector<16x16xf32> -> vector<16x16xf32>
    %cst_22 = arith.constant -1.000000e+30 : f32
    %75 = vector.broadcast %cst_22 : f32 to vector<16x16xf32>
    %76 = arith.select %5, %74, %75 : vector<16x16xi1>, vector<16x16xf32>
    %cst_23 = arith.constant dense<0xFF800000> : vector<16xf32>
    %77 = vector.multi_reduction <maximumf>, %76, %cst_23 [1] : vector<16x16xf32> to vector<16xf32>
    %78 = vector.shape_cast %77 : vector<16xf32> to vector<16x1xf32>
    %79 = vector.broadcast %78 : vector<16x1xf32> to vector<16x16xf32>
    %80 = arith.subf %76, %79 : vector<16x16xf32>
    %81 = math.exp %80 : vector<16x16xf32>
    %cst_24 = arith.constant dense<0.000000e+00> : vector<16xf32>
    %82 = vector.multi_reduction <add>, %81, %cst_24 [1] : vector<16x16xf32> to vector<16xf32>
    %83 = vector.shape_cast %82 : vector<16xf32> to vector<16x1xf32>
    %84 = tpu.reciprocal %83 {approx = true} : vector<16x1xf32> -> vector<16x1xf32>
    %85 = arith.mulf %83, %84 : vector<16x1xf32>
    %cst_25 = arith.constant 2.000000e+00 : f32
    %86 = vector.broadcast %cst_25 : f32 to vector<16x1xf32>
    %87 = arith.subf %86, %85 : vector<16x1xf32>
    %88 = arith.mulf %84, %87 : vector<16x1xf32>
    %89 = vector.broadcast %88 : vector<16x1xf32> to vector<16x16xf32>
    %90 = arith.mulf %81, %89 : vector<16x16xf32>
    %91 = arith.truncf %90 : vector<16x16xf32> to vector<16x16xbf16>
    %cst_26 = arith.constant dense<0.000000e+00> : vector<16x32xf32>
    %92 = tpu.matmul %91, %73, %cst_26 {dimension_numbers = #tpu.dot_dimension_numbers<[1], [0], [0], [1], [0, 0, 1, 1], [], []>} : vector<16x16xbf16>, vector<16x32xbf16>, vector<16x32xf32> -> vector<16x32xf32>
    %93 = arith.truncf %92 : vector<16x32xf32> to vector<16x32xbf16>
    %c64 = arith.constant 64 : index
    %c0_27 = arith.constant 0 : index
    %94 = vector.load %arg3[%c64, %c0_27] : memref<128x128xbf16, #tpu.memory_space<vmem>>, vector<32x128xbf16>
    %cst_28 = arith.constant dense<0.000000e+00> : vector<16x128xf32>
    %95 = tpu.matmul %93, %94, %cst_28 {dimension_numbers = #tpu.dot_dimension_numbers<[1], [0], [0], [1], [0, 0, 1, 1], [], []>} : vector<16x32xbf16>, vector<32x128xbf16>, vector<16x128xf32> -> vector<16x128xf32>
    %96 = arith.addf %67, %95 : vector<16x128xf32>
    %97 = vector.extract_strided_slice %6 {offsets = [0, 96], sizes = [16, 32], strides = [1, 1]} : vector<16x128xf32> to vector<16x32xf32>
    %98 = arith.truncf %97 : vector<16x32xf32> to vector<16x32xbf16>
    %99 = vector.extract_strided_slice %7 {offsets = [0, 96], sizes = [16, 32], strides = [1, 1]} : vector<16x128xf32> to vector<16x32xf32>
    %100 = arith.truncf %99 : vector<16x32xf32> to vector<16x32xbf16>
    %101 = vector.extract_strided_slice %8 {offsets = [0, 96], sizes = [16, 32], strides = [1, 1]} : vector<16x128xf32> to vector<16x32xf32>
    %102 = arith.truncf %101 : vector<16x32xf32> to vector<16x32xbf16>
    %cst_29 = arith.constant dense<0.000000e+00> : vector<16x16xf32>
    %103 = tpu.matmul %98, %100, %cst_29 {dimension_numbers = #tpu.dot_dimension_numbers<[1], [1], [0], [0], [0, 0, 1, 0], [], []>} : vector<16x32xbf16>, vector<16x32xbf16>, vector<16x16xf32> -> vector<16x16xf32>
    %cst_30 = arith.constant -1.000000e+30 : f32
    %104 = vector.broadcast %cst_30 : f32 to vector<16x16xf32>
    %105 = arith.select %5, %103, %104 : vector<16x16xi1>, vector<16x16xf32>
    %cst_31 = arith.constant dense<0xFF800000> : vector<16xf32>
    %106 = vector.multi_reduction <maximumf>, %105, %cst_31 [1] : vector<16x16xf32> to vector<16xf32>
    %107 = vector.shape_cast %106 : vector<16xf32> to vector<16x1xf32>
    %108 = vector.broadcast %107 : vector<16x1xf32> to vector<16x16xf32>
    %109 = arith.subf %105, %108 : vector<16x16xf32>
    %110 = math.exp %109 : vector<16x16xf32>
    %cst_32 = arith.constant dense<0.000000e+00> : vector<16xf32>
    %111 = vector.multi_reduction <add>, %110, %cst_32 [1] : vector<16x16xf32> to vector<16xf32>
    %112 = vector.shape_cast %111 : vector<16xf32> to vector<16x1xf32>
    %113 = tpu.reciprocal %112 {approx = true} : vector<16x1xf32> -> vector<16x1xf32>
    %114 = arith.mulf %112, %113 : vector<16x1xf32>
    %cst_33 = arith.constant 2.000000e+00 : f32
    %115 = vector.broadcast %cst_33 : f32 to vector<16x1xf32>
    %116 = arith.subf %115, %114 : vector<16x1xf32>
    %117 = arith.mulf %113, %116 : vector<16x1xf32>
    %118 = vector.broadcast %117 : vector<16x1xf32> to vector<16x16xf32>
    %119 = arith.mulf %110, %118 : vector<16x16xf32>
    %120 = arith.truncf %119 : vector<16x16xf32> to vector<16x16xbf16>
    %cst_34 = arith.constant dense<0.000000e+00> : vector<16x32xf32>
    %121 = tpu.matmul %120, %102, %cst_34 {dimension_numbers = #tpu.dot_dimension_numbers<[1], [0], [0], [1], [0, 0, 1, 1], [], []>} : vector<16x16xbf16>, vector<16x32xbf16>, vector<16x32xf32> -> vector<16x32xf32>
    %122 = arith.truncf %121 : vector<16x32xf32> to vector<16x32xbf16>
    %c96 = arith.constant 96 : index
    %c0_35 = arith.constant 0 : index
    %123 = vector.load %arg3[%c96, %c0_35] : memref<128x128xbf16, #tpu.memory_space<vmem>>, vector<32x128xbf16>
    %cst_36 = arith.constant dense<0.000000e+00> : vector<16x128xf32>
    %124 = tpu.matmul %122, %123, %cst_36 {dimension_numbers = #tpu.dot_dimension_numbers<[1], [0], [0], [1], [0, 0, 1, 1], [], []>} : vector<16x32xbf16>, vector<32x128xbf16>, vector<16x128xf32> -> vector<16x128xf32>
    %125 = arith.addf %96, %124 : vector<16x128xf32>
    %c0_37 = arith.constant 0 : index
    %c0_38 = arith.constant 0 : index
    %126 = vector.load %arg4[%c0_37, %c0_38] : memref<1x128xf32, #tpu.memory_space<vmem>>, vector<1x128xf32>
    %127 = vector.broadcast %126 : vector<1x128xf32> to vector<16x128xf32>
    %128 = arith.addf %125, %127 : vector<16x128xf32>
    %c0_39 = arith.constant 0 : index
    %c0_40 = arith.constant 0 : index
    %129 = vector.load %arg5[%c0_39, %c0_40] : memref<16x128xf32, #tpu.memory_space<vmem>>, vector<16x128xf32>
    tpu.vector_store %arg5[%c0_39, %c0_40], %128 {strides = array<i32>} : memref<16x128xf32, #tpu.memory_space<vmem>>, vector<16x128xf32>,
    return
  }
  func.func @transform_0(%arg0: i32) -> (i32, i32) {
    %c0_i32 = arith.constant 0 : i32
    %c0_i32_0 = arith.constant 0 : i32
    return %arg0, %c0_i32 : i32, i32
  }
  func.func @transform_1(%arg0: i32) -> (i32, i32) {
    %c0_i32 = arith.constant 0 : i32
    %c0_i32_0 = arith.constant 0 : i32
    %c0_i32_1 = arith.constant 0 : i32
    return %c0_i32, %c0_i32_0 : i32, i32
  }
  func.func @transform_2(%arg0: i32) -> (i32, i32) {
    %c0_i32 = arith.constant 0 : i32
    %c0_i32_0 = arith.constant 0 : i32
    %c0_i32_1 = arith.constant 0 : i32
    return %c0_i32, %c0_i32_0 : i32, i32
  }
  func.func @transform_3(%arg0: i32) -> (i32, i32) {
    %c0_i32 = arith.constant 0 : i32
    %c0_i32_0 = arith.constant 0 : i32
    %c0_i32_1 = arith.constant 0 : i32
    return %c0_i32, %c0_i32_0 : i32, i32
  }
  func.func @transform_4(%arg0: i32) -> (i32, i32) {
    %c0_i32 = arith.constant 0 : i32
    %c0_i32_0 = arith.constant 0 : i32
    return %arg0, %c0_i32 : i32, i32
  }
}

</mosaic_0001>

<bundles_post_ra>
// kernel: tpu_custom_call.1
= control target key start
LH: loop header
LB: loop body
LE: loop exit
PB: predicated region body
PF: predicated region fallthrough
CT: control target
= control target key end

     0   :  { %9 = vsyncpa [#allocation3], 0  ;;  %s2340_s0 = inlined_call_operand.hbm [shape: bf16[32,128], index: 0, kind: input, shape index: {}]   ;;  %s2341_s1 = inlined_call_operand.hbm [shape: bf16[128,384], index: 1, kind: input, shape index: {}]   ;;  %s2342_s2 = inlined_call_operand.hbm [shape: bf16[128,128], index: 2, kind: input, shape index: {}]   ;;  %s2343_s3 = inlined_call_operand.vmem [shape: f32[1,128], index: 3, kind: input, shape index: {}]   ;;  %s2344_s4 = inlined_call_operand.hbm [shape: f32[32,128], index: 4, kind: output, shape index: {}]  }
   0x1   :  { %11 = vsyncpa [#allocation3 + $0x1], 0 }
   0x2   :  { %12 = vsyncpa [#allocation6], 0 }
   0x3   :  { %13 = vsyncpa [#allocation4], 0 }
   0x4   :  { %15 = vsyncpa [#allocation4 + $0x1], 0  ;;  %s1943_s15 = smov 0   ;;  %s1945_s16 = smov 0  }
   0x5   :  { %s1947_s17 = smov 0   ;;  %s1949_s18 = smov 0  }
   0x6 LB: > { %s1964_s19 = sadd.s32 4294967295, %s1900_s18   ;;  %s1389_s20 = sadd.s32 4294967294, %s1900_s18   ;;  %s1900_s18 = sphi %s1949_s18, %s2364_s18   ;;  %s1896_s17 = sphi %s1947_s17, %s2363_s17   ;;  %s1892_s16 = sphi %s1945_s16, %s2362_s16   ;;  %s1888_s15 = sphi %s1943_s15, %s2361_s15  }
   0x7   : > { %p41_p0 = scmp.ne.s32.totalorder %s1892_s16, %s1888_s15  ;;  %p2345_p1 = scmp.eq.s32.totalorder %s1964_s19, 0 }
   0x8   : > { %p134_p3 = scmp.eq.s32.totalorder %s1389_s20, 1  ;;  %p1390_p5 = scmp.ge.s32.totalorder %s1900_s18, 1 }
   0x9   : > { %p1973_p4 = por %p2345_p1, %p41_p0  ;;  %p141_p7 = scmp.lt.s32.totalorder %s1900_s18, 3 }
   0xa   : > { %p1978_p6 = por %p134_p3, %p41_p0  ;;  %s1902_s24 = smov [#allocation5]  }
   0xb   : > { %s2348_s21 = scalar_select %p1973_p4, 1, 0 }
   0xc   : > { %s2349_s22 = scalar_select %p1978_p6, 1, 0 }
   0xd   : > { %p1983_p8 = pnand %p1390_p5, %p141_p7  ;;  %s153_s25 = sshll.u32 %s1902_s24, 4  ;;  %s1987_s25 = int_to_ptr.vmem [resolvable:$true] %s153_s25 }
   0xe   : > { %s1903_s27 = smov [#allocation7]   ;;  %s1744_s5 = scalar_lea.hbm %s2341_s1, 3072 }
   0xf   : > { %p1604_p9 = pneg %p1983_p8  ;;  %s166_s28 = sshll.u32 %s1903_s27, 4  ;;  %s1998_s28 = int_to_ptr.vmem [resolvable:$true] %s166_s28 }
  0x10   : > { %p1745_p12 = scmp.ne.s32.totalorder %s2341_s1, %s1744_s5  ;;  %p1751_p5 = scmp.lt.u32.totalorder %s1744_s5, %s2341_s1 }
  0x11   : > { %p1994_p11 = pnand %p1604_p9, %p2345_p1 }
  0x13   : > { %p1746_p13 = pneg %p1994_p11 }
  0x15   : > { %p1747_p0 = pnand %p1746_p13, %p1745_p12 }
  0x17   : > { %p1748_p3 = pneg %p1747_p0 }
  0x19   : > { %p1753_p7 = pnand %p1751_p5, %p1748_p3 }
  0x1b   : > { %1756 = shalt.err (!%p1753_p7)
}
  0x1c   : > { %s1757_s10 = scalar_lea.vmem %s1987_s25, 3072  ;;  %p1765_p2 = scmp.lt.s32.totalorder %s1987_s25, %s1987_s25 }
  0x1d   : > { %p1758_p9 = scmp.ne.s32.totalorder %s1987_s25, %s1757_s10  ;;  %p1766_p12 = scmp.lt.s32.totalorder %s1757_s10, %s1757_s10 }
  0x1f   : > { %p1760_p10 = pnand %p1758_p9, %p1746_p13  ;;  %p1767_p0 = por %p1766_p12, %p1765_p2 }
  0x21   : > { %p1761_p1 = pneg %p1760_p10 }
  0x23   : > { %p1768_p6 = pnand %p1767_p0, %p1761_p1 }
  0x25   : > { %1771 = shalt.err (!%p1768_p6)
}
  0x26   : > { %s1904_s11 = smov 192   ;;  %s1905_s12 = smov 12  }
  0x27   : > { %1607 = dma.hbm_to_vmem [thread:$0]  (!%p1994_p11), %s2341_s1, 3072, %s1987_s25, [#allocation6], %s1904_s11, %s1904_s11, %s1905_s12  }
  0x28   : > { %s1772_s27 = scalar_lea.hbm %s2342_s2, 1024 }
  0x29   : > { %p1773_p2 = scmp.ne.s32.totalorder %s2342_s2, %s1772_s27  ;;  %p1779_p10 = scmp.lt.u32.totalorder %s1772_s27, %s2342_s2 }
  0x2b   : > { %p1775_p1 = pnand %p1773_p2, %p1746_p13 }
  0x2d   : > { %p1776_p6 = pneg %p1775_p1 }
  0x2f   : > { %p1781_p3 = pnand %p1779_p10, %p1776_p6 }
  0x31   : > { %1784 = shalt.err (!%p1781_p3)
}
  0x32   : > { %s1785_s25 = scalar_lea.vmem %s1998_s28, 1024  ;;  %p1793_p12 = scmp.lt.s32.totalorder %s1998_s28, %s1998_s28 }
  0x33   : > { %p1786_p5 = scmp.ne.s32.totalorder %s1998_s28, %s1785_s25  ;;  %p1794_p0 = scmp.lt.s32.totalorder %s1785_s25, %s1785_s25 }
  0x35   : > { %p1788_p7 = pnand %p1786_p5, %p1746_p13  ;;  %p1795_p2 = por %p1794_p0, %p1793_p12 }
  0x37   : > { %p1789_p9 = pneg %p1788_p7 }
  0x39   : > { %p1796_p1 = pnand %p1795_p2, %p1789_p9 }
  0x3b   : > { %1799 = shalt.err (!%p1796_p1)
}
  0x3c   : > { %s1906_s7 = smov 64   ;;  %s1907_s8 = smov 4  }
  0x3d   : > { %1610 = dma.hbm_to_vmem [thread:$0]  (!%p1994_p11), %s2342_s2, 1024, %s1998_s28, [#allocation6], %s1906_s7, %s1906_s7, %s1907_s8  }
  0x3e   : > { %s2056_s11 = sadd.s32 1, %s1900_s18   ;;  %s28_s13 = sadd.s32 1, %s1896_s17 }
  0x3f   : > { %s25_s12 = ssub.s32 %s1900_s18, %s2056_s11  ;;  %p35_p6 = scmp.ne.s32.totalorder %s1896_s17, %s1892_s16 }
  0x40   : > { %p26_p13 = scmp.eq.s32.totalorder %s25_s12, 0  ;;  %p36_p10 = scmp.eq.s32.totalorder %s1900_s18, 0 }
  0x41   : > { %p2352_p5 = scmp.eq.s32.totalorder %s1964_s19, 1  ;;  %p1621_p9 = scmp.lt.s32.totalorder %s1900_s18, 2 }
  0x42   : > { %s2065_s14 = scalar_select %p26_p13, %s1896_s17, %s28_s13  }
  0x43   : > { %p37_p3 = por %p36_p10, %p35_p6  ;;  %p2069_p7 = por %p2352_p5, %p35_p6 }
  0x44   : > { %s183_s20 = sand.u32 1, %s1896_s17   ;;  %s1453_s28 = sshll.u32 %s1900_s18, 7 }
  0x45   : > { %s2353_s26 = scalar_select %p2069_p7, 1, 0 }
  0x46   : > { %s1394_s24 = sshll.u32 %s183_s20, 3  ;;  %s2079_s30 = scalar_lea.hbm %s2340_s0, %s1453_s28 }
  0x47   : > { %s187_s5 = scalar_lea.vmem [#allocation2], %s1394_s24  ;;  %p2083_p11 = pnand %p1621_p9, %p37_p3 }
  0x48   : > { %s194_s6 = sshll.u32 %s187_s5, 4  ;;  %s2087_s9 = scalar_lea.sflag [#allocation3], %s183_s20  ;;  %s2081_s6 = int_to_ptr.vmem [resolvable:$true] %s194_s6 }
  0x49   : > { %s1800_s10 = scalar_lea.hbm %s2079_s30, 128  ;;  %p1802_p0 = pneg %p2083_p11 }
  0x4a   : > { %p1801_p12 = scmp.ne.s32.totalorder %s2079_s30, %s1800_s10  ;;  %s1805_s24 = scalar_lea.hbm %s2340_s0, 256 }
  0x4b   : > { %p1806_p13 = scmp.lt.u32.totalorder %s2079_s30, %s2340_s0  ;;  %p1807_p6 = scmp.lt.u32.totalorder %s1805_s24, %s1800_s10 }
  0x4c   : > { %p1803_p2 = pnand %p1802_p0, %p1801_p12  ;;  %p1809_p3 = scmp.lt.u32.totalorder %s1800_s10, %s2079_s30 }
  0x4d   : > { %p1808_p10 = por %p1807_p6, %p1806_p13 }
  0x4e   : > { %p1804_p1 = pneg %p1803_p2 }
  0x4f   : > { %p1810_p5 = por %p1809_p3, %p1808_p10 }
  0x51   : > { %p1811_p9 = pnand %p1810_p5, %p1804_p1 }
  0x53   : > { %1814 = shalt.err (!%p1811_p9)
}
  0x54   : > { %s1815_s20 = scalar_lea.vmem %s2081_s6, 128  ;;  %s1908_s29 = smov [#allocation2]  }
  0x55   : > { %p1816_p12 = scmp.ne.s32.totalorder %s2081_s6, %s1815_s20  ;;  %s1820_s5 = sshll.u32 %s1908_s29, 4  ;;  %s1821_s5 = int_to_ptr.vmem [resolvable:$false] %s1820_s5 }
  0x56   : > { %s1822_s12 = scalar_lea.vmem %s1821_s5, 256  ;;  %p1823_p4 = scmp.lt.s32.totalorder %s2081_s6, %s1821_s5 }
  0x57   : > { %p1818_p2 = pnand %p1816_p12, %p1802_p0  ;;  %p1824_p13 = scmp.lt.s32.totalorder %s1822_s12, %s1815_s20 }
  0x59   : > { %p1819_p7 = pneg %p1818_p2  ;;  %p1825_p6 = por %p1824_p13, %p1823_p4 }
  0x5b   : > { %p1826_p10 = pnand %p1825_p6, %p1819_p7 }
  0x5d   : > { %1829 = shalt.err (!%p1826_p10)
}
  0x5e   : > { %1614 = dma.hbm_to_vmem [thread:$0]  (!%p2083_p11), %s2079_s30, 128, %s2081_s6, %s2087_s9, %s1906_s7, %s1906_s7, %s1907_s8  }
  0x5f   : > { %206 = sbr.rel (%p1983_p8) target bundleno = 2777 (0xad9), region = 36  ;;  %s2121_s10 = sand.u32 (!%p1983_p8), 1, %s1892_s16  }
  0x60   : > { %s1398_s13 = sshll.u32 (!%p1983_p8), %s2121_s10, 3  ;;  %s209_s24 = scalar_lea.sflag (!%p1983_p8), [#allocation3], %s2121_s10 }
  0x61   : > { %s2125_s28 = scalar_lea.vmem (!%p1983_p8), [#allocation2], %s1398_s13  ;;  %p2355_p4 = scmp.ne.s32.totalorder (!%p1983_p8), %s2348_s21, 0 }
  0x66   : > { %1875 = dma.done.wait (%p2355_p4), %s209_s24, 128  }
  0x67   : > { %1877 = vsyncadd (%p2355_p4), %s209_s24, 4294967168  ;;  %p2356_p7 = scmp.eq.s32.totalorder %s1964_s19, 0 }
  0x69   : > { %1879 = dma.done.wait (%p2356_p7), [#allocation6], 4096   ;;  %p2357_p8 = pmov %p2356_p7 }
  0x6a   : > { %v1909_v0 = vmov 0   ;;  %v1671_v1 = vld [vmem:[#allocation5 + $0x4] ss:$12 sps:$4 sm:$0xff]   ;;  %v1673_v2 = vld [vmem:[#allocation5] ss:$12 sps:$4 sm:$0xff]   ;;  %v1910_v18 = vmov 0.0   ;;  %v500_v37 = vlaneseq }
  0x6b   : > { %1881 = vsyncadd (%p2357_p8), [#allocation6], 4294963200  ;;  %448 = vmatprep.mubr.bf16.mxu0 %v1909_v0  ;;  %416 = vmatprep.subr.bf16.mxu0 %v1671_v1  ;;  %v1674_v3 = vld [vmem:[#allocation5 + $0x1c] ss:$12 sps:$4 sm:$0xff]   ;;  %v1676_v4 = vld [vmem:[#allocation5 + $0x18] ss:$12 sps:$4 sm:$0xff]  }
  0x6c   : > { %417 = vmatpush1.bf16.msra.mxu0 %v1673_v2  ;;  %v1677_v5 = vld [vmem:[#allocation5 + $0x34] ss:$12 sps:$4 sm:$0xff]   ;;  %v1679_v6 = vld [vmem:[#allocation5 + $0x30] ss:$12 sps:$4 sm:$0xff]   ;;  %v1680_v7 = vld [vmem:[#allocation5 + $0x4c] ss:$12 sps:$4 sm:$0xff]   ;;  %1492 = vmatprep.subr.bf16.mxu1 %v1910_v18 }
  0x6d   : > { %418 = vmatprep.subr.bf16.mxu0 %v1674_v3  ;;  %v1682_v8 = vld [vmem:[#allocation5 + $0x48] ss:$12 sps:$4 sm:$0xff]   ;;  %v1683_v9 = vld [vmem:[#allocation5 + $0x64] ss:$12 sps:$4 sm:$0xff]   ;;  %v1685_v10 = vld [vmem:[#allocation5 + $0x60] ss:$12 sps:$4 sm:$0xff]  }
  0x6e   : > { %v1686_v11 = vld [vmem:[#allocation5 + $0x7c] ss:$12 sps:$4 sm:$0xff]   ;;  %v1688_v12 = vld [vmem:[#allocation5 + $0x78] ss:$12 sps:$4 sm:$0xff]   ;;  %v1689_v13 = vld [vmem:[#allocation5 + $0x94] ss:$12 sps:$4 sm:$0xff]  }
  0x6f   : > { %v1691_v14 = vld [vmem:[#allocation5 + $0x90] ss:$12 sps:$4 sm:$0xff]   ;;  %v1692_v15 = vld [vmem:[#allocation5 + $0xac] ss:$12 sps:$4 sm:$0xff]   ;;  %v1694_v16 = vld [vmem:[#allocation5 + $0xa8] ss:$12 sps:$4 sm:$0xff]  }
  0x70   : > { %419 = vmatpush1.bf16.msra.mxu0 %v1676_v4  ;;  %v1695_v17 = vld [vmem:[%s2125_s28] sm:$0xff]   ;;  %vm1911_vm0 = vmmov 0   ;;  %vm510_vm1 = vcmask 261120   ;;  %s1912_s21 = smov 96   ;;  %v1697_v27 = vld [vmem:[#allocation5 + $0x20] ss:$12 sps:$4 sm:$0xff]  }
  0x71   : > { %420 = vmatprep.subr.bf16.mxu0 %v1677_v5  ;;  %1508 = vmatprep.mubr.msk.bf16.mxu1 %vm1911_vm0, %v1910_v18  ;;  %v1696_v26 = vld [vmem:[#allocation5 + $0x8] ss:$12 sps:$4 sm:$0xff]   ;;  %v1698_v28 = vld [vmem:[#allocation5 + $0x38] ss:$12 sps:$4 sm:$0xff]   ;;  %v1699_v29 = vld [vmem:[#allocation5 + $0x50] ss:$12 sps:$4 sm:$0xff]  }
  0x72   : > { %1493 = vmatpush3.bf16.msra.mxu1 %v1696_v26  ;;  %v1700_v30 = vld [vmem:[#allocation5 + $0x68] ss:$12 sps:$4 sm:$0xff]   ;;  %v1701_v33 = vld [vmem:[#allocation5 + $0x80] ss:$12 sps:$4 sm:$0xff]   ;;  %v1702_v34 = vld [vmem:[#allocation5 + $0x98] ss:$12 sps:$4 sm:$0xff]  }
  0x73   : > { %1494 = vmatprep.subr.bf16.mxu1 %v1910_v18  ;;  %v1703_v36 = vld [vmem:[#allocation5 + $0xb0] ss:$12 sps:$4 sm:$0xff]   ;;  %v2172_v38 = vshrl.u32 %v500_v37, 7  ;;  %v2174_v39 = vand.u32 127, %v500_v37  ;;  %vm560_vm3 = vcmask 130048   ;;  %s1913_s23 = smov 64  }
  0x74   : > { %421 = vmatpush1.bf16.msra.mxu0 %v1679_v6  ;;  %s1914_s7 = smov 32   ;;  %s1401_s8 = sshll.u32 %s2121_s10, 4 }
  0x75   : > { %422 = vmatprep.subr.bf16.mxu0 %v1680_v7  ;;  %v2177_v40 = vadd.s32 8, %v2172_v38  ;;  %vm505_vm2 = vcmp.le.s32.totalorder %v2174_v39, %v2172_v38  ;;  %s244_s25 = scalar_lea.vmem [#allocation8], %s1401_s8  ;;  %s1454_s27 = sshll.u32 %s1964_s19, 8 }
  0x76   : > { %1495 = vmatpush3.bf16.msra.mxu1 %v1697_v27  ;;  %s1297_s9 = sshll.u32 %s244_s25, 4  ;;  %s2296_s5 = scalar_lea.hbm %s2344_s4, %s1454_s27  ;;  %s2291_s9 = int_to_ptr.vmem [resolvable:$true] %s1297_s9 }
  0x77   : > { %1496 = vmatprep.subr.bf16.mxu1 %v1910_v18  ;;  %vm506_vm4 = vcmp.le.s32.totalorder %v2174_v39, %v2177_v40  ;;  %s1284_s12 = scalar_lea.sflag [#allocation4], %s2121_s10  ;;  %s1830_s13 = scalar_lea.vmem %s2291_s9, 256 }
  0x78   : > { %423 = vmatpush1.bf16.msra.mxu0 %v1682_v8  ;;  %p1831_p11 = scmp.ne.s32.totalorder %s2291_s9, %s1830_s13  ;;  %p2358_p0 = scmp.ne.s32.totalorder %s2353_s26, 0 }
  0x79   : > { %424 = vmatprep.subr.bf16.mxu0 %v1683_v9  ;;  %s1915_s19 = smov [#allocation8]  }
  0x7a   : > { %1497 = vmatpush3.bf16.msra.mxu1 %v1698_v28  ;;  %p1832_p1 = pnand %p1831_p11, %p2358_p0  ;;  %s1834_s24 = sshll.u32 %s1915_s19, 4  ;;  %s1835_s24 = int_to_ptr.vmem [resolvable:$false] %s1834_s24 }
  0x7b   : > { %1498 = vmatprep.subr.bf16.mxu1 %v1910_v18  ;;  %s1836_s28 = scalar_lea.vmem %s1835_s24, 512  ;;  %p1837_p5 = scmp.lt.s32.totalorder %s2291_s9, %s1835_s24 }
  0x7c   : > { %425 = vmatpush1.bf16.msra.mxu0 %v1685_v10  ;;  %p1833_p3 = pneg %p1832_p1  ;;  %p1838_p9 = scmp.lt.s32.totalorder %s1836_s28, %s1830_s13 }
  0x7d   : > { %426 = vmatprep.subr.bf16.mxu0 %v1686_v11 }
  0x7e   : > { %1499 = vmatpush3.bf16.msra.mxu1 %v1699_v29  ;;  %p1839_p12 = por %p1838_p9, %p1837_p5 }
  0x7f   : > { %1500 = vmatprep.subr.bf16.mxu1 %v1910_v18 }
  0x80   : > { %427 = vmatpush1.bf16.msra.mxu0 %v1688_v12  ;;  %p1840_p2 = pnand %p1839_p12, %p1833_p3 }
  0x81   : > { %428 = vmatprep.subr.bf16.mxu0 %v1689_v13 }
  0x82   : > { %1501 = vmatpush3.bf16.msra.mxu1 %v1700_v30 }
  0x83   : > { %1502 = vmatprep.subr.bf16.mxu1 %v1910_v18 }
  0x84   : > { %429 = vmatpush1.bf16.msra.mxu0 %v1691_v14 }
  0x85   : > { %430 = vmatprep.subr.bf16.mxu0 %v1692_v15 }
  0x86   : > { %1503 = vmatpush3.bf16.msra.mxu1 %v1701_v33 }
  0x87   : > { %1504 = vmatprep.subr.bf16.mxu1 %v1910_v18 }
  0x88   : > { %431 = vmatpush1.bf16.msra.mxu0 %v1694_v16 }
  0x89   : > { %1512 = vmatprep.subr.bf16.mxu0 %v1910_v18 }
  0x8a   : > { %1505 = vmatpush3.bf16.msra.mxu1 %v1702_v34  ;;  %v1706_v34 = vld [vmem:[#allocation7 + $0x10] sm:$0xff]  }
  0x8b   : > { %449 = vmatmul.mubr.bf16.vlgmr.msra.gmra.mrb[0].mxu0 %v1695_v17  ;;  %1506 = vmatprep.subr.bf16.mxu1 %v1910_v18 }
  0x8c   : > { %1514 = vmatprep.mubr.msk.bf16.mxu0 %vm1911_vm0, %v1910_v18 }
  0x8e   : > { %1507 = vmatpush3.bf16.msra.mxu1 %v1703_v36  ;;  %v1707_v36 = vld [vmem:[#allocation7 + $0x18] sm:$0xff]  }
  0x8f   : > { %1518 = vmatprep.subr.bf16.mxu1 %v1910_v18 }
  0x91   : > { %1509 = vmatmul.mubr.bf16.vlgmr.msra.gmra.mrb[0].mxu1 %v1695_v17 }
  0x92   : > { %1520 = vmatprep.mubr.msk.bf16.mxu1 %vm1911_vm0, %v1910_v18 }
 0x15e   : > { %v450_v19 = vpop.f32.mrb[0].mxu0 }
 0x15f   : > { %v452_v20 = vpop.f32.mrb[1].mxu0 }
 0x160   : > { %v454_v21 = vpop.f32.mrb[2].mxu0 }
 0x161   : > { %v2142_v22 = vpack.c.bf16 %v454_v21, %v450_v19  ;;  %v456_v23 = vpop.f32.mrb[3].mxu0 }
 0x162   : > { %v2144_v24 = vpack.c.bf16 %v456_v23, %v452_v20 }
 0x164   : > { %643 = vrot.lane.b32.xlu0 %v2144_v24, %s1912_s21  ;;  %v515_v25 = vsel %vm510_vm1, %v2144_v24, 0  ;;  %v493_v63 = vpop.f32.mrb[0].mxu1 }
 0x165   : > { %1513 = vmatpush3.bf16.xpose.msra.mxu0 %v515_v25  ;;  %v1510_v0 = vpop.f32.mrb[1].mxu1 }
 0x166   : > { %1524 = vmatprep.subr.bf16.mxu0 %v1910_v18  ;;  %v496_v1 = vpop.f32.mrb[2].mxu1 }
 0x167   : > { %v2201_v2 = vpack.c.bf16 %v496_v1, %v493_v63  ;;  %v1511_v3 = vpop.f32.mrb[3].mxu1 }
 0x168   : > { %640 = vrot.lane.b32.xlu0 %v2142_v22, %s1912_s21 }
 0x169   : > { %1519 = vmatpush3.bf16.msra.mxu1 %v2201_v2 }
 0x16a   : > { %1530 = vmatprep.subr.bf16.mxu1 %v1910_v18 }
 0x16c   : > { %1515 = vmatmul.mubr.msk.bf16.vlgmr.msra.gmra.mrb[4].mxu0 %vm510_vm1, %v2142_v22 }
 0x16d   : > { %1526 = vmatprep.mubr.msk.bf16.mxu0 %vm1911_vm0, %v1910_v18 }
 0x1d6   : > { %v644_v31 = vpop.permute.xlu0 %643 }
 0x1d7   : > { %v649_v32 = vsel %vm510_vm1, %v644_v31, 0 }
 0x1d8   : > { %1525 = vmatpush3.bf16.xpose.msra.mxu0 %v649_v32 }
 0x1d9   : > { %1536 = vmatprep.subr.bf16.mxu0 %v1910_v18 }
 0x1da   : > { %v641_v35 = vpop.permute.xlu0 %640 }
 0x1df   : > { %1527 = vmatmul.mubr.msk.bf16.vlgmr.msra.gmra.mrb[8].mxu0 %vm510_vm1, %v641_v35 }
 0x1e0   : > { %1540 = vmatprep.mubr.msk.bf16.mxu0 %vm1911_vm0, %v1910_v18  ;;  %1537 = vmatpush3.bf16.msra.mxu0 %v1706_v34 }
 0x1e1   : > { %1538 = vmatprep.subr.bf16.mxu0 %v1910_v18 }
 0x1e4   : > { %1539 = vmatpush3.bf16.msra.mxu0 %v1707_v36 }
 0x1e5   : > { %1552 = vmatprep.subr.bf16.mxu0 %v1910_v18 }
 0x23f   : > { %v551_v41 = vpop.f32.mrb[4].mxu0 }
 0x240   : > { %v558_v42 = vsel %vm505_vm2, %v551_v41, -1e+30  ;;  %v1516_v43 = vpop.f32.mrb[5].mxu0 }
 0x241   : > { %v554_v44 = vpop.f32.mrb[6].mxu0  ;;  %v561_v45 = vsel %vm560_vm3, %v558_v42, -inf }
 0x242   : > { %v559_v46 = vsel %vm506_vm4, %v554_v44, -1e+30  ;;  %562 = vmax.xlane.f32.xlu1 %v561_v45  ;;  %v1517_v47 = vpop.f32.mrb[7].mxu0 }
 0x243   : > { %v564_v48 = vsel %vm560_vm3, %v559_v46, -inf }
 0x246   : > { %565 = vmax.xlane.f32.xlu1 %v564_v48 }
 0x2b2   : > { %v685_v49 = vpop.f32.mrb[8].mxu0 }
 0x2b3   : > { %v692_v50 = vsel %vm505_vm2, %v685_v49, -1e+30  ;;  %v1528_v51 = vpop.f32.mrb[9].mxu0 }
 0x2b4   : > { %v688_v52 = vpop.f32.mrb[10].mxu0  ;;  %v694_v53 = vsel %vm560_vm3, %v692_v50, -inf }
 0x2b5   : > { %v693_v54 = vsel %vm506_vm4, %v688_v52, -1e+30  ;;  %695 = vmax.xlane.f32.xlu0 %v694_v53  ;;  %v1529_v55 = vpop.f32.mrb[11].mxu0  ;;  %v1704_v52 = vld [vmem:[#allocation7] sm:$0xff]  }
 0x2b6   : > { %v697_v56 = vsel %vm560_vm3, %v693_v54, -inf }
 0x2b7   : > { %698 = vmax.xlane.f32.xlu1 %v697_v56 }
 0x2cb   : > { %890 = vrot.lane.b32.xlu0 %v2144_v24, %s1913_s23 }
 0x2cf   : > { %v563_v57 = vpop.xlane.xlu1 %562 }
 0x2d0   : > { %v567_v58 = vsub.f32 %v558_v42, %v563_v57 }
 0x2d2   : > { %v569_v59 = vmul.f32 1.442695, %v567_v58 }
 0x2d3   : > { %v566_v60 = vpop.xlane.xlu1 %565 }
 0x2d4   : > { %1712 = vpow2.f32 %v569_v59  ;;  %v568_v61 = vsub.f32 %v559_v46, %v566_v60 }
 0x2d6   : > { %v571_v62 = vmul.f32 1.442695, %v568_v61 }
 0x2d8   : > { %1714 = vpow2.f32 %v571_v62 }
 0x2de   : > { %v1713_v4 = vpop.eup %1712 }
 0x2df   : > { %v573_v5 = vsel %vm560_vm3, %v1713_v4, 0.0 }
 0x2e0   : > { %574 = vadd.xlane.f32.xlu1 %v573_v5 }
 0x2e2   : > { %v1715_v6 = vpop.eup %1714 }
 0x2e3   : > { %v576_v7 = vsel %vm560_vm3, %v1715_v6, 0.0 }
 0x2e4   : > { %577 = vadd.xlane.f32.xlu1 %v576_v7 }
 0x342   : > { %v696_v8 = vpop.xlane.xlu0 %695 }
 0x343   : > { %v700_v9 = vsub.f32 %v692_v50, %v696_v8 }
 0x344   : > { %v699_v10 = vpop.xlane.xlu1 %698 }
 0x345   : > { %v702_v11 = vmul.f32 1.442695, %v700_v9  ;;  %v701_v12 = vsub.f32 %v693_v54, %v699_v10  ;;  %v1705_v54 = vld [vmem:[#allocation7 + $0x8] sm:$0xff]  }
 0x346   : > { %v891_v62 = vpop.permute.xlu0 %890 }
 0x347   : > { %1716 = vpow2.f32 %v702_v11  ;;  %v704_v13 = vmul.f32 1.442695, %v701_v12  ;;  %v896_v3 = vsel %vm510_vm1, %v891_v62, 0 }
 0x349   : > { %1718 = vpow2.f32 %v704_v13 }
 0x351   : > { %v1717_v14 = vpop.eup %1716 }
 0x352   : > { %v706_v15 = vsel %vm560_vm3, %v1717_v14, 0.0 }
 0x353   : > { %v1719_v16 = vpop.eup %1718  ;;  %707 = vadd.xlane.f32.xlu1 %v706_v15 }
 0x354   : > { %v709_v17 = vsel %vm560_vm3, %v1719_v16, 0.0 }
 0x357   : > { %710 = vadd.xlane.f32.xlu1 %v709_v17 }
 0x368   : > { %724 = vrot.lane.b32.xlu1 %v2201_v2, %s1912_s21 }
 0x36c   : > { %888 = vrot.lane.b32.xlu1 %v2142_v22, %s1913_s23 }
 0x36d   : > { %v575_v19 = vpop.xlane.xlu1 %574 }
 0x36e   : > { %1720 = vrcp.f32 %v575_v19 }
 0x371   : > { %v578_v20 = vpop.xlane.xlu1 %577 }
 0x372   : > { %1722 = vrcp.f32 %v578_v20 }
 0x378   : > { %v1721_v21 = vpop.eup %1720 }
 0x379   : > { %v581_v23 = vmul.f32 %v1721_v21, %v575_v19 }
 0x37b   : > { %v583_v25 = vsub.f32 2.0, %v581_v23 }
 0x37c   : > { %v1723_v26 = vpop.eup %1722 }
 0x37d   : > { %v582_v27 = vmul.f32 %v1723_v26, %v578_v20  ;;  %v585_v28 = vmul.f32 %v1721_v21, %v583_v25 }
 0x37f   : > { %v584_v29 = vsub.f32 2.0, %v582_v27  ;;  %v587_v31 = vmul.f32 %v1713_v4, %v585_v28 }
 0x381   : > { %v586_v30 = vmul.f32 %v1723_v26, %v584_v29 }
 0x383   : > { %v588_v32 = vmul.f32 %v1715_v6, %v586_v30 }
 0x385   : > { %v589_v33 = vpack.c.bf16 %v588_v32, %v587_v31 }
 0x387   : > { %1521 = vmatmul.mubr.msk.bf16.vlgmr.msra.gmra.mrb[4].mxu1 %vm560_vm3, %v589_v33 }
 0x388   : > { %1532 = vmatprep.mubr.msk.bf16.mxu1 %vm1911_vm0, %v1910_v18 }
 0x3e0   : > { %v708_v35 = vpop.xlane.xlu1 %707 }
 0x3e1   : > { %1724 = vrcp.f32 %v708_v35 }
 0x3e4   : > { %v711_v37 = vpop.xlane.xlu1 %710 }
 0x3e5   : > { %1726 = vrcp.f32 %v711_v37 }
 0x3e8   : > { %v725_v41 = vpop.permute.xlu1 %724 }
 0x3e9   : > { %1531 = vmatpush3.bf16.msra.mxu1 %v725_v41 }
 0x3ea   : > { %1544 = vmatprep.subr.bf16.mxu1 %v1910_v18 }
 0x3eb   : > { %v1725_v42 = vpop.eup %1724 }
 0x3ec   : > { %v714_v43 = vmul.f32 %v1725_v42, %v708_v35  ;;  %v889_v4 = vpop.permute.xlu1 %888 }
 0x3ee   : > { %v716_v44 = vsub.f32 2.0, %v714_v43 }
 0x3ef   : > { %v1727_v45 = vpop.eup %1726 }
 0x3f0   : > { %v715_v46 = vmul.f32 %v1727_v45, %v711_v37  ;;  %v718_v47 = vmul.f32 %v1725_v42, %v716_v44  ;;  %v1708_v37 = vld [vmem:[#allocation7 + $0x20] sm:$0xff]  }
 0x3f2   : > { %v717_v48 = vsub.f32 2.0, %v715_v46  ;;  %v720_v50 = vmul.f32 %v1717_v14, %v718_v47 }
 0x3f4   : > { %v719_v49 = vmul.f32 %v1727_v45, %v717_v48 }
 0x3f6   : > { %v721_v51 = vmul.f32 %v1719_v16, %v719_v49 }
 0x3f8   : > { %v722_v53 = vpack.c.bf16 %v721_v51, %v720_v50 }
 0x3fa   : > { %1533 = vmatmul.mubr.msk.bf16.vlgmr.msra.gmra.mrb[8].mxu1 %vm560_vm3, %v722_v53 }
 0x3fb   : > { %1545 = vmatpush3.bf16.msra.mxu1 %v1704_v52  ;;  %1548 = vmatprep.mubr.msk.bf16.mxu1 %vm1911_vm0, %v1910_v18 }
 0x3fc   : > { %1546 = vmatprep.subr.bf16.mxu1 %v1910_v18 }
 0x3ff   : > { %1547 = vmatpush3.bf16.msra.mxu1 %v1705_v54 }
 0x400   : > { %1558 = vmatprep.subr.bf16.mxu1 %v1910_v18 }
 0x45a   : > { %v627_v55 = vpop.f32.mrb[4].mxu1 }
 0x45b   : > { %v1522_v56 = vpop.f32.mrb[5].mxu1 }
 0x45c   : > { %v630_v57 = vpop.f32.mrb[6].mxu1 }
 0x45d   : > { %v634_v58 = vpack.c.bf16 %v630_v57, %v627_v55  ;;  %v1523_v59 = vpop.f32.mrb[7].mxu1  ;;  %v1709_v55 = vld [vmem:[#allocation7 + $0x28] sm:$0xff]  }
 0x45f   : > { %1549 = vmatmul.mubr.msk.bf16.vlgmr.msra.gmra.mrb[12].mxu1 %vm510_vm1, %v634_v58 }
 0x460   : > { %1560 = vmatprep.mubr.msk.bf16.mxu1 %vm1911_vm0, %v1910_v18 }
 0x4cd   : > { %v764_v60 = vpop.f32.mrb[8].mxu1 }
 0x4ce   : > { %v1534_v61 = vpop.f32.mrb[9].mxu1 }
 0x4cf   : > { %v767_v63 = vpop.f32.mrb[10].mxu1 }
 0x4d0   : > { %v771_v0 = vpack.c.bf16 %v767_v63, %v764_v60  ;;  %v1535_v1 = vpop.f32.mrb[11].mxu1 }
 0x4d2   : > { %1541 = vmatmul.mubr.msk.bf16.vlgmr.msra.gmra.mrb[12].mxu0 %vm510_vm1, %v771_v0 }
 0x4d3   : > { %1553 = vmatpush3.bf16.xpose.msra.mxu0 %v896_v3  ;;  %1554 = vmatprep.mubr.msk.bf16.mxu0 %vm1911_vm0, %v1910_v18 }
 0x4d4   : > { %1564 = vmatprep.subr.bf16.mxu0 %v1910_v18 }
 0x4da   : > { %1555 = vmatmul.mubr.msk.bf16.vlgmr.msra.gmra.mrb[16].mxu0 %vm510_vm1, %v889_v4 }
 0x4db   : > { %1568 = vmatprep.mubr.msk.bf16.mxu0 %vm1911_vm0, %v1910_v18  ;;  %1565 = vmatpush3.bf16.msra.mxu0 %v1708_v37 }
 0x4dc   : > { %1566 = vmatprep.subr.bf16.mxu0 %v1910_v18 }
 0x4df   : > { %1567 = vmatpush3.bf16.msra.mxu0 %v1709_v55 }
 0x4e0   : > { %1578 = vmatprep.subr.bf16.mxu0 %v1910_v18 }
 0x532   : > { %v881_v5 = vpop.f32.mrb[12].mxu1 }
 0x533   : > { %v1550_v6 = vpop.f32.mrb[13].mxu1 }
 0x534   : > { %v884_v7 = vpop.f32.mrb[14].mxu1 }
 0x535   : > { %v1551_v8 = vpop.f32.mrb[15].mxu1 }
 0x5a5   : > { %v825_v9 = vpop.f32.mrb[12].mxu0 }
 0x5a6   : > { %v2235_v10 = vadd.f32 %v881_v5, %v825_v9  ;;  %v1542_v11 = vpop.f32.mrb[13].mxu0 }
 0x5a7   : > { %v828_v12 = vpop.f32.mrb[14].mxu0 }
 0x5a8   : > { %v2237_v13 = vadd.f32 %v884_v7, %v828_v12  ;;  %v1543_v14 = vpop.f32.mrb[15].mxu0 }
 0x5ad   : > { %v932_v15 = vpop.f32.mrb[16].mxu0 }
 0x5ae   : > { %v939_v16 = vsel %vm505_vm2, %v932_v15, -1e+30  ;;  %v1556_v17 = vpop.f32.mrb[17].mxu0 }
 0x5af   : > { %v935_v19 = vpop.f32.mrb[18].mxu0  ;;  %v941_v20 = vsel %vm560_vm3, %v939_v16, -inf }
 0x5b0   : > { %v940_v21 = vsel %vm506_vm4, %v935_v19, -1e+30  ;;  %942 = vmax.xlane.f32.xlu1 %v941_v20  ;;  %v1557_v23 = vpop.f32.mrb[19].mxu0 }
 0x5b1   : > { %v944_v25 = vsel %vm560_vm3, %v940_v21, -inf }
 0x5b2   : > { %945 = vmax.xlane.f32.xlu0 %v944_v25 }
 0x5c8   : > { %970 = vrot.lane.b32.xlu0 %v2201_v2, %s1913_s23 }
 0x63d   : > { %v943_v26 = vpop.xlane.xlu1 %942 }
 0x63e   : > { %v947_v27 = vsub.f32 %v939_v16, %v943_v26  ;;  %v1710_v16 = vld [vmem:[#allocation7 + $0x30] sm:$0xff]  }
 0x63f   : > { %v946_v28 = vpop.xlane.xlu0 %945 }
 0x640   : > { %v949_v29 = vmul.f32 1.442695, %v947_v27  ;;  %v948_v30 = vsub.f32 %v940_v21, %v946_v28 }
 0x642   : > { %1728 = vpow2.f32 %v949_v29  ;;  %v951_v31 = vmul.f32 1.442695, %v948_v30 }
 0x643   : > { %v971_v32 = vpop.permute.xlu0 %970 }
 0x644   : > { %1730 = vpow2.f32 %v951_v31  ;;  %1559 = vmatpush3.bf16.msra.mxu1 %v971_v32 }
 0x645   : > { %1572 = vmatprep.subr.bf16.mxu1 %v1910_v18 }
 0x64c   : > { %v1729_v33 = vpop.eup %1728 }
 0x64d   : > { %v953_v34 = vsel %vm560_vm3, %v1729_v33, 0.0 }
 0x64e   : > { %v1731_v35 = vpop.eup %1730  ;;  %954 = vadd.xlane.f32.xlu1 %v953_v34 }
 0x64f   : > { %v956_v36 = vsel %vm560_vm3, %v1731_v35, 0.0 }
 0x652   : > { %957 = vadd.xlane.f32.xlu1 %v956_v36 }
 0x663   : > { %1082 = vrot.lane.b32.xlu1 %v2144_v24, %s1914_s7 }
 0x667   : > { %1080 = vrot.lane.b32.xlu1 %v2142_v22, %s1914_s7 }
 0x6db   : > { %v955_v41 = vpop.xlane.xlu1 %954 }
 0x6dc   : > { %1732 = vrcp.f32 %v955_v41 }
 0x6df   : > { %v958_v42 = vpop.xlane.xlu1 %957 }
 0x6e0   : > { %1734 = vrcp.f32 %v958_v42 }
 0x6e3   : > { %v1083_v52 = vpop.permute.xlu1 %1082 }
 0x6e4   : > { %v1088_v53 = vsel %vm510_vm1, %v1083_v52, 0 }
 0x6e6   : > { %v1733_v43 = vpop.eup %1732 }
 0x6e7   : > { %v961_v44 = vmul.f32 %v1733_v43, %v955_v41  ;;  %v1081_v54 = vpop.permute.xlu1 %1080 }
 0x6e9   : > { %v963_v45 = vsub.f32 2.0, %v961_v44 }
 0x6ea   : > { %v1735_v46 = vpop.eup %1734 }
 0x6eb   : > { %v962_v47 = vmul.f32 %v1735_v46, %v958_v42  ;;  %v965_v48 = vmul.f32 %v1733_v43, %v963_v45  ;;  %v1447_v45 = vld [vmem:[%s2343_s3] ss:$0 sm:$0xff] }
 0x6ed   : > { %v964_v49 = vsub.f32 2.0, %v962_v47  ;;  %v967_v24 = vmul.f32 %v1729_v33, %v965_v48 }
 0x6ef   : > { %v966_v50 = vmul.f32 %v1735_v46, %v964_v49 }
 0x6f1   : > { %v968_v51 = vmul.f32 %v1731_v35, %v966_v50 }
 0x6f3   : > { %v969_v22 = vpack.c.bf16 %v968_v51, %v967_v24 }
 0x6f5   : > { %1561 = vmatmul.mubr.msk.bf16.vlgmr.msra.gmra.mrb[16].mxu1 %vm560_vm3, %v969_v22 }
 0x6f6   : > { %1573 = vmatpush3.bf16.xpose.msra.mxu1 %v1088_v53  ;;  %1574 = vmatprep.mubr.msk.bf16.mxu1 %vm1911_vm0, %v1910_v18 }
 0x6f7   : > { %1584 = vmatprep.subr.bf16.mxu1 %v1910_v18 }
 0x6fd   : > { %1575 = vmatmul.mubr.msk.bf16.vlgmr.msra.gmra.mrb[20].mxu1 %vm510_vm1, %v1081_v54 }
 0x6fe   : > { %1588 = vmatprep.mubr.msk.bf16.mxu1 %vm1911_vm0, %v1910_v18  ;;  %1585 = vmatpush3.bf16.msra.mxu1 %v1710_v16 }
 0x6ff   : > { %1586 = vmatprep.subr.bf16.mxu1 %v1910_v18 }
 0x7c8   : > { %v1010_v56 = vpop.f32.mrb[16].mxu1 }
 0x7c9   : > { %v1562_v57 = vpop.f32.mrb[17].mxu1 }
 0x7ca   : > { %v1013_v58 = vpop.f32.mrb[18].mxu1 }
 0x7cb   : > { %v1017_v59 = vpack.c.bf16 %v1013_v58, %v1010_v56  ;;  %v1563_v60 = vpop.f32.mrb[19].mxu1 }
 0x7cd   : > { %1569 = vmatmul.mubr.msk.bf16.vlgmr.msra.gmra.mrb[20].mxu0 %vm510_vm1, %v1017_v59 }
 0x7ce   : > { %1580 = vmatprep.mubr.msk.bf16.mxu0 %vm1911_vm0, %v1910_v18 }
 0x7d0   : > { %v1124_v61 = vpop.f32.mrb[20].mxu1 }
 0x7d1   : > { %v1131_v62 = vsel %vm505_vm2, %v1124_v61, -1e+30  ;;  %v1576_v63 = vpop.f32.mrb[21].mxu1 }
 0x7d2   : > { %v1127_v0 = vpop.f32.mrb[22].mxu1  ;;  %v1133_v1 = vsel %vm560_vm3, %v1131_v62, -inf }
 0x7d3   : > { %v1132_v3 = vsel %vm506_vm4, %v1127_v0, -1e+30  ;;  %1134 = vmax.xlane.f32.xlu0 %v1133_v1  ;;  %v1577_v4 = vpop.f32.mrb[23].mxu1 }
 0x7d4   : > { %v1136_v5 = vsel %vm560_vm3, %v1132_v3, -inf }
 0x7d5   : > { %1137 = vmax.xlane.f32.xlu1 %v1136_v5 }
 0x7e6   : > { %1162 = vrot.lane.b32.xlu1 %v2201_v2, %s1914_s7 }
 0x860   : > { %v1135_v6 = vpop.xlane.xlu0 %1134 }
 0x861   : > { %v1139_v7 = vsub.f32 %v1131_v62, %v1135_v6 }
 0x862   : > { %v1138_v38 = vpop.xlane.xlu1 %1137 }
 0x863   : > { %v1141_v8 = vmul.f32 1.442695, %v1139_v7  ;;  %v1140_v9 = vsub.f32 %v1132_v3, %v1138_v38 }
 0x865   : > { %1736 = vpow2.f32 %v1141_v8  ;;  %v1143_v11 = vmul.f32 1.442695, %v1140_v9 }
 0x866   : > { %v1163_v12 = vpop.permute.xlu1 %1162 }
 0x867   : > { %1738 = vpow2.f32 %v1143_v11  ;;  %1579 = vmatpush3.bf16.msra.mxu0 %v1163_v12 }
 0x86f   : > { %v1737_v39 = vpop.eup %1736 }
 0x870   : > { %v1145_v40 = vsel %vm560_vm3, %v1737_v39, 0.0 }
 0x871   : > { %v1739_v14 = vpop.eup %1738  ;;  %1146 = vadd.xlane.f32.xlu0 %v1145_v40 }
 0x872   : > { %v1148_v15 = vsel %vm560_vm3, %v1739_v14, 0.0 }
 0x875   : > { %1149 = vadd.xlane.f32.xlu0 %v1148_v15 }
 0x8a0   : > { %v1071_v2 = vpop.f32.mrb[20].mxu0 }
 0x8a1   : > { %v1078_v17 = vadd.f32 %v1071_v2, %v2235_v10  ;;  %v1570_v19 = vpop.f32.mrb[21].mxu0 }
 0x8a2   : > { %v1074_v20 = vpop.f32.mrb[22].mxu0 }
 0x8a3   : > { %v1079_v21 = vadd.f32 %v1074_v20, %v2237_v13  ;;  %v1571_v23 = vpop.f32.mrb[23].mxu0  ;;  %v1711_v13 = vld [vmem:[#allocation7 + $0x38] sm:$0xff]  }
 0x8a4   : > { %1587 = vmatpush3.bf16.msra.mxu1 %v1711_v13 }
 0x8fe   : > { %v1147_v25 = vpop.xlane.xlu0 %1146 }
 0x8ff   : > { %1740 = vrcp.f32 %v1147_v25 }
 0x902   : > { %v1150_v26 = vpop.xlane.xlu0 %1149 }
 0x903   : > { %1742 = vrcp.f32 %v1150_v26 }
 0x909   : > { %v1741_v27 = vpop.eup %1740 }
 0x90a   : > { %v1153_v28 = vmul.f32 %v1741_v27, %v1147_v25 }
 0x90c   : > { %v1155_v29 = vsub.f32 2.0, %v1153_v28 }
 0x90d   : > { %v1743_v30 = vpop.eup %1742 }
 0x90e   : > { %v1154_v31 = vmul.f32 %v1743_v30, %v1150_v26  ;;  %v1157_v32 = vmul.f32 %v1741_v27, %v1155_v29 }
 0x910   : > { %v1156_v18 = vsub.f32 2.0, %v1154_v31  ;;  %v1159_v34 = vmul.f32 %v1737_v39, %v1157_v32 }
 0x912   : > { %v1158_v33 = vmul.f32 %v1743_v30, %v1156_v18 }
 0x914   : > { %v1160_v10 = vmul.f32 %v1739_v14, %v1158_v33 }
 0x916   : > { %v1161_v35 = vpack.c.bf16 %v1160_v10, %v1159_v34 }
 0x918   : > { %1581 = vmatmul.mubr.msk.bf16.vlgmr.msra.gmra.mrb[24].mxu0 %vm560_vm3, %v1161_v35 }
 0x9eb   : > { %v1202_v36 = vpop.f32.mrb[24].mxu0 }
 0x9ec   : > { %v1582_v37 = vpop.f32.mrb[25].mxu0 }
 0x9ed   : > { %v1205_v41 = vpop.f32.mrb[26].mxu0 }
 0x9ee   : > { %v1209_v42 = vpack.c.bf16 %v1205_v41, %v1202_v36  ;;  %v1583_v43 = vpop.f32.mrb[27].mxu0 }
 0x9f0   : > { %1589 = vmatmul.mubr.msk.bf16.vlgmr.msra.gmra.mrb[24].mxu1 %vm510_vm1, %v1209_v42 }
 0xac3   : > { %v1263_v44 = vpop.f32.mrb[24].mxu1 }
 0xac4   : > { %v1270_v46 = vadd.f32 %v1263_v44, %v1078_v17  ;;  %v1590_v47 = vpop.f32.mrb[25].mxu1 }
 0xac5   : > { %v1266_v48 = vpop.f32.mrb[26].mxu1 }
 0xac6   : > { %v1279_v49 = vadd.f32 %v1447_v45, %v1270_v46  ;;  %v1271_v50 = vadd.f32 %v1266_v48, %v1079_v21  ;;  %v1591_v24 = vpop.f32.mrb[27].mxu1 }
 0xac8   : > { %1281 = vst [vmem:[%s244_s25] sm:$0xff] %v1279_v49  ;;  %v1280_v51 = vadd.f32 %v1447_v45, %v1271_v50 }
 0xaca   : > { %1282 = vst [vmem:[%s244_s25 + $0x8] sm:$0xff] %v1280_v51 }
 0xacb   : > { %1843 = shalt.err (!%p1840_p2)
}
 0xacc   : > { %s1844_s21 = scalar_lea.hbm %s2296_s5, 256  ;;  %s1848_s8 = scalar_lea.hbm %s2344_s4, 512 }
 0xacd   : > { %p1845_p13 = scmp.ne.s32.totalorder %s2296_s5, %s1844_s21  ;;  %p1849_p4 = scmp.lt.u32.totalorder %s2296_s5, %s2344_s4 }
 0xace   : > { %p1850_p7 = scmp.lt.u32.totalorder %s1848_s8, %s1844_s21  ;;  %p1852_p11 = scmp.lt.u32.totalorder %s1844_s21, %s2296_s5 }
 0xacf   : > { %p1846_p6 = pnand %p1845_p13, %p2358_p0 }
 0xad0   : > { %p1851_p8 = por %p1850_p7, %p1849_p4 }
 0xad1   : > { %p1847_p10 = pneg %p1846_p6 }
 0xad2   : > { %p1853_p1 = por %p1852_p11, %p1851_p8 }
 0xad4   : > { %p1854_p3 = pnand %p1853_p1, %p1847_p10 }
 0xad6   : > { %1857 = shalt.err (!%p1854_p3)
}
 0xad7   : > { %s1916_s25 = smov 128   ;;  %s1917_s27 = smov 8  }
 0xad8   : > { %1602 = dma.vmem_to_hbm [thread:$0]  (%p2358_p0), %s2291_s9, 256, %s2296_s5, %s1284_s12, %s1916_s25, %s1916_s25, %s1917_s27  }
 0xad9 PF: > { %s1312_s20 = sand.u32 1, %s1888_s15   ;;  %p2359_p5 = scmp.ne.s32.totalorder %s2349_s22, 0 }
 0xada   : > { %p2360_p9 = scmp.ge.s32.totalorder %s1900_s18, 2  ;;  %s1313_s29 = scalar_lea.sflag [#allocation4], %s1312_s20 }
 0xadc   : > { %p1616_p12 = pnand %p2360_p9, %p2359_p5 }
 0xade   : > { %1883 = dma.done.wait (!%p1616_p12), %s1313_s29, 256  }
 0xadf   : > { %1885 = vsyncadd (!%p1616_p12), %s1313_s29, 4294967040  ;;  %p18_p2 = scmp.ge.s32.totalorder %s2056_s11, 4   ;;  %s2361_s15 = smov %s1892_s16 }
 0xae0   : > { %s2362_s16 = smov %s1896_s17  ;;  %s2363_s17 = smov %s2065_s14 }
 0xae1   : > { %s2364_s18 = smov %s2056_s11  ;;  %20 = sbr.rel (!%p18_p2) target bundleno = 6 (0x6), region = 89 }
 0xae8   :  { %1318 = vsyncpa [#allocation3], 1 }
 0xae9   :  { %1320 = vsyncpa [#allocation3 + $0x1], 1 }
 0xaea   :  { %1321 = vsyncpa [#allocation6], 1 }
 0xaeb   :  { %1322 = vsyncpa [#allocation4], 1 }
 0xaec   :  { %1324 = vsyncpa [#allocation4 + $0x1], 1 }

</bundles_post_ra>
